<compile_context>
chip_gen: v6e
topology: v6e:2x2x1
jax: 0.10.0
libtpu: 0.0.40
codegen_flags: <defaults>
</compile_context>

<pallas_src>
import jax
import jax.numpy as jnp
from jax import lax
from jax.experimental import pallas as pl
from jax.experimental.pallas import tpu as pltpu


def _down_kernel(xe_ref, xo_ref, xh_ref, w_ref, b_ref, o_ref):
    """One (tile_co, tile_l) output tile of Conv1d(C, C, 3, stride=2, pad=1)."""
    l = pl.program_id(2)                       # L-tile index
    even = xe_ref[...]                         # (C_in, T)      x[2t]    -> tap k=1
    odd = xo_ref[...]                          # (C_in, T)      x[2t+1]  -> tap k=2
    halo = xh_ref[...]                         # (C_in, halo_w) block ending at 2*t0-1

    # Left neighbour of this tile's first output: x[2*t0 - 1] (zero for the
    # globally-first tile == the conv's left zero padding).
    prev = halo[:, -1:] * (l > 0).astype(halo.dtype)          # (C_in, 1)

    t = even.shape[-1]
    if t == 1:
        tap0 = prev
    else:
        tap0 = jnp.concatenate([prev, odd[:, : t - 1]], axis=1)  # x[2t-1] -> tap k=0

    # Feature order f = k*C_in + ci matches the (C_out, 3*C_in) weight layout.
    feats = jnp.concatenate([tap0, even, odd], axis=0)           # (3*C_in, T)
    acc = jnp.dot(w_ref[...], feats, preferred_element_type=jnp.float32)
    o_ref[...] = (acc + b_ref[...]).astype(o_ref.dtype)


def downsample_forward(x, weight, bias, *, compute_dtype=jnp.bfloat16,
                       out_dtype=None):
    """Conv1d(C_in, C_out, kernel=3, stride=2, padding=1), NCL layout.

    x:      (N, C_in, L)
    weight: (C_out, C_in, 3)
    bias:   (C_out,)
    returns (N, C_out, L_out) with L_out = (L + 2 - 3)//2 + 1
    """
    N, C_in, L = x.shape
    C_out, _, K = weight.shape
    assert K == 3, "DownSample is a kernel-size-3, stride-2 conv"
    L_out = (L + 2 - K) // 2 + 1               # == ceil(L / 2)
    out_dtype = x.dtype if out_dtype is None else out_dtype

    in_isz = jnp.dtype(compute_dtype).itemsize
    out_isz = jnp.dtype(out_dtype).itemsize
    c3 = K * C_in

    # ---- generation-aware VMEM budget (v5e/v6e: 128 MiB, v7x: 64 MiB) -----
    try:
        vmem_cap = int(pltpu.get_tpu_info().vmem_capacity_bytes)
    except Exception:
        vmem_cap = 64 * 1024 * 1024            # conservative (v7x-sized) fallback
    budget = max(32 * 1024 * 1024,
                 min(int(0.72 * vmem_cap), vmem_cap - 8 * 1024 * 1024))

    # ---- C_out tiling: keep the (double-buffered) weight block bounded -----
    tile_co = C_out
    while (tile_co % 16 == 0 and tile_co > 128
           and 2 * tile_co * c3 * in_isz > budget // 4):
        tile_co //= 2

    # ---- L_out tiling: largest lane tile that fits the remaining budget ----
    bytes_per_col = (2 * 2 * C_in * in_isz      # even + odd blocks, double buffered
                     + 2 * tile_co * out_isz    # output block, double buffered
                     + 3 * C_in * in_isz        # stacked-taps temporary
                     + 4 * tile_co)             # f32 accumulator temporary
    fixed = (2 * tile_co * c3 * in_isz          # weight block, double buffered
             + 2 * C_in * 128 * in_isz          # halo block, double buffered
             + 2 * tile_co * 4                  # bias
             + 4 * 1024 * 1024)                 # Mosaic internal scratch slack
    tile_cap = (budget - fixed) // max(bytes_per_col, 1)
    tile_cap = max(128, min(2048, (tile_cap // 128) * 128))

    if L_out <= tile_cap:
        tile_l, n_l = L_out, 1                  # full-extent block, no raggedness
    else:
        tile_l = tile_cap                       # multiple of 128
        n_l = pl.cdiv(L_out, tile_l)

    # Feed both v7x TensorCores even for degenerate (N=1, single-L-tile) grids.
    if N * n_l == 1 and tile_co == C_out and C_out % 16 == 0:
        tile_co = C_out // 2
    n_co = C_out // tile_co

    # ---- build the even / odd sample streams (1.0x of x, bf16) -------------
    l_in = n_l * tile_l
    x_even = x[:, :, 0::2].astype(compute_dtype)          # (N, C_in, ceil(L/2))
    x_odd = x[:, :, 1::2].astype(compute_dtype)           # (N, C_in, floor(L/2))
    if l_in > x_even.shape[-1]:
        x_even = jnp.pad(x_even, ((0, 0), (0, 0), (0, l_in - x_even.shape[-1])))
    if l_in > x_odd.shape[-1]:
        x_odd = jnp.pad(x_odd, ((0, 0), (0, 0), (0, l_in - x_odd.shape[-1])))

    # weight -> (C_out, 3*C_in), feature order f = k*C_in + ci
    w_mat = jnp.transpose(weight, (0, 2, 1)).reshape(C_out, c3).astype(compute_dtype)
    b_col = bias.astype(jnp.float32).reshape(C_out, 1)

    # ---- halo spec: last odd sample of the previous L tile -----------------
    if n_l > 1:
        halo_w = 128
        steps = tile_l // 128
        halo_idx = lambda co, n, l: (n, 0, jnp.maximum(l * steps - 1, 0))
    else:
        halo_w = min(128, l_in)
        halo_idx = lambda co, n, l: (n, 0, 0)

    grid = (n_co, N, n_l)

    in_specs = [
        pl.BlockSpec((None, C_in, tile_l), lambda co, n, l: (n, 0, l)),   # even
        pl.BlockSpec((None, C_in, tile_l), lambda co, n, l: (n, 0, l)),   # odd
        pl.BlockSpec((None, C_in, halo_w), halo_idx),                     # odd halo
        pl.BlockSpec((tile_co, c3), lambda co, n, l: (co, 0)),            # weight
        pl.BlockSpec((tile_co, 1), lambda co, n, l: (co, 0)),             # bias
    ]
    out_spec = pl.BlockSpec((None, tile_co, tile_l), lambda co, n, l: (n, co, l))

    cost = pl.CostEstimate(
        flops=2 * N * C_out * c3 * L_out,
        transcendentals=0,
        bytes_accessed=int(x_even.size * in_isz + x_odd.size * in_isz
                           + w_mat.size * in_isz + b_col.size * 4
                           + N * C_out * L_out * out_isz),
    )

    return pl.pallas_call(
        _down_kernel,
        out_shape=jax.ShapeDtypeStruct((N, C_out, L_out), out_dtype),
        grid=grid,
        in_specs=in_specs,
        out_specs=out_spec,
        compiler_params=pltpu.CompilerParams(
            dimension_semantics=("parallel", "parallel", "parallel"),
            vmem_limit_bytes=int(budget),
        ),
        cost_estimate=cost,
    )(x_even, x_odd, x_odd, w_mat, b_col)


if __name__ == "__main__":
    key = jax.random.PRNGKey(0)
    kx, kw, kb = jax.random.split(key, 3)

    N, C, L = 2, 4, 16
    x = jax.random.normal(kx, (N, C, L), dtype=jnp.float32)

    # Deterministic parameter init (Conv1d default-style uniform bound).
    fan_in = C * 3
    bound = 1.0 / (fan_in ** 0.5)
    weight = jax.random.uniform(kw, (C, C, 3), jnp.float32, -bound, bound)
    bias = jax.random.uniform(kb, (C,), jnp.float32, -bound, bound)

    y = jax.jit(downsample_forward)(x, weight, bias)
    y = jax.block_until_ready(y)

    # Pure-JAX reference using the same bf16-rounded operands (the kernel keeps
    # f32 accumulation), so differences are accumulation-order ulps only.
    x_bf = x.astype(jnp.bfloat16).astype(jnp.float32)
    w_bf = weight.astype(jnp.bfloat16).astype(jnp.float32)
    ref = lax.conv_general_dilated(
        x_bf, w_bf, window_strides=(2,), padding=((1, 1),),
        dimension_numbers=("NCH", "OIH", "NCH"),
        precision=lax.Precision.HIGHEST,
    ) + bias[None, :, None]

    L_out = (L + 2 - 3) // 2 + 1
    assert y.shape == (N, C, L_out), y.shape
    max_err = float(jnp.max(jnp.abs(y - ref)))
    assert jnp.allclose(y, ref, atol=1e-4, rtol=1e-4), max_err
    print("KERNEL_OK")
</pallas_src>

<mosaic_0001>
module attributes {stable_mosaic.version = 11 : i64} {
  func.func @_down_kernel(%arg0: i32, %arg1: i32, %arg2: i32, %arg3: memref<1x4x8xbf16, #tpu.memory_space<vmem>>, %arg4: memref<1x4x8xbf16, #tpu.memory_space<vmem>>, %arg5: memref<1x4x8xbf16, #tpu.memory_space<vmem>>, %arg6: memref<4x12xbf16, #tpu.memory_space<vmem>>, %arg7: memref<4x1xf32, #tpu.memory_space<vmem>>, %arg8: memref<1x4x8xf32, #tpu.memory_space<vmem>>) attributes {dimension_semantics = [#tpu.dimension_semantics<parallel>, #tpu.dimension_semantics<parallel>, #tpu.dimension_semantics<parallel>], iteration_bounds = array<i64: 1, 2, 1>, scalar_prefetch = 0 : i64, scratch_operands = 0 : i64, tpu.core_type = #tpu.core_type<tc>, window_params = [{transform_indices = @transform_0, window_bounds = array<i64: 1, 4, 8>}, {transform_indices = @transform_1, window_bounds = array<i64: 1, 4, 8>}, {transform_indices = @transform_2, window_bounds = array<i64: 1, 4, 8>}, {transform_indices = @transform_3, window_bounds = array<i64: 4, 12>}, {transform_indices = @transform_4, window_bounds = array<i64: 4, 1>}, {transform_indices = @transform_5, window_bounds = array<i64: 1, 4, 8>}]} {
    %c0 = arith.constant 0 : index
    %c0_0 = arith.constant 0 : index
    %c0_1 = arith.constant 0 : index
    %0 = vector.load %arg3[%c0, %c0_0, %c0_1] : memref<1x4x8xbf16, #tpu.memory_space<vmem>>, vector<1x4x8xbf16>
    %1 = vector.shape_cast %0 : vector<1x4x8xbf16> to vector<4x8xbf16>
    %c0_2 = arith.constant 0 : index
    %c0_3 = arith.constant 0 : index
    %c0_4 = arith.constant 0 : index
    %2 = vector.load %arg4[%c0_2, %c0_3, %c0_4] : memref<1x4x8xbf16, #tpu.memory_space<vmem>>, vector<1x4x8xbf16>
    %3 = vector.shape_cast %2 : vector<1x4x8xbf16> to vector<4x8xbf16>
    %c0_5 = arith.constant 0 : index
    %c0_6 = arith.constant 0 : index
    %c0_7 = arith.constant 0 : index
    %4 = vector.load %arg5[%c0_5, %c0_6, %c0_7] : memref<1x4x8xbf16, #tpu.memory_space<vmem>>, vector<1x4x8xbf16>
    %5 = vector.shape_cast %4 : vector<1x4x8xbf16> to vector<4x8xbf16>
    %6 = vector.extract_strided_slice %5 {offsets = [0, 7], sizes = [4, 1], strides = [1, 1]} : vector<4x8xbf16> to vector<4x1xbf16>
    %c0_i32 = arith.constant 0 : i32
    %7 = arith.cmpi sgt, %arg2, %c0_i32 : i32
    %8 = arith.extui %7 : i1 to i32
    %9 = arith.sitofp %8 : i32 to f32
    %10 = arith.truncf %9 : f32 to bf16
    %11 = vector.broadcast %10 : bf16 to vector<4x1xbf16>
    %12 = arith.mulf %6, %11 : vector<4x1xbf16>
    %13 = vector.extract_strided_slice %3 {offsets = [0, 0], sizes = [4, 7], strides = [1, 1]} : vector<4x8xbf16> to vector<4x7xbf16>
    %14 = tpu.concatenate %12, %13 in 1 : vector<4x1xbf16>, vector<4x7xbf16> -> vector<4x8xbf16>
    %15 = tpu.concatenate %14, %1, %3 in 0 : vector<4x8xbf16>, vector<4x8xbf16>, vector<4x8xbf16> -> vector<12x8xbf16>
    %c0_8 = arith.constant 0 : index
    %c0_9 = arith.constant 0 : index
    %16 = vector.load %arg6[%c0_8, %c0_9] : memref<4x12xbf16, #tpu.memory_space<vmem>>, vector<4x12xbf16>
    %cst = arith.constant dense<0.000000e+00> : vector<4x8xf32>
    %17 = tpu.matmul %16, %15, %cst {dimension_numbers = #tpu.dot_dimension_numbers<[1], [0], [0], [1], [0, 0, 1, 1], [], []>} : vector<4x12xbf16>, vector<12x8xbf16>, vector<4x8xf32> -> vector<4x8xf32>
    %c0_10 = arith.constant 0 : index
    %c0_11 = arith.constant 0 : index
    %18 = vector.load %arg7[%c0_10, %c0_11] : memref<4x1xf32, #tpu.memory_space<vmem>>, vector<4x1xf32>
    %19 = vector.broadcast %18 : vector<4x1xf32> to vector<4x8xf32>
    %20 = arith.addf %17, %19 : vector<4x8xf32>
    %c0_12 = arith.constant 0 : index
    %c0_13 = arith.constant 0 : index
    %c0_14 = arith.constant 0 : index
    %21 = vector.load %arg8[%c0_12, %c0_13, %c0_14] : memref<1x4x8xf32, #tpu.memory_space<vmem>>, vector<1x4x8xf32>
    %22 = vector.shape_cast %21 : vector<1x4x8xf32> to vector<4x8xf32>
    %23 = vector.shape_cast %20 : vector<4x8xf32> to vector<1x4x8xf32>
    tpu.vector_store %arg8[%c0_12, %c0_13, %c0_14], %23 {strides = array<i32>} : memref<1x4x8xf32, #tpu.memory_space<vmem>>, vector<1x4x8xf32>,
    return
  }
  func.func @transform_0(%arg0: i32, %arg1: i32, %arg2: i32) -> (i32, i32, i32) {
    %c0_i32 = arith.constant 0 : i32
    %c0_i32_0 = arith.constant 0 : i32
    return %arg1, %c0_i32, %arg2 : i32, i32, i32
  }
  func.func @transform_1(%arg0: i32, %arg1: i32, %arg2: i32) -> (i32, i32, i32) {
    %c0_i32 = arith.constant 0 : i32
    %c0_i32_0 = arith.constant 0 : i32
    return %arg1, %c0_i32, %arg2 : i32, i32, i32
  }
  func.func @transform_2(%arg0: i32, %arg1: i32, %arg2: i32) -> (i32, i32, i32) {
    %c0_i32 = arith.constant 0 : i32
    %c0_i32_0 = arith.constant 0 : i32
    %c0_i32_1 = arith.constant 0 : i32
    return %arg1, %c0_i32, %c0_i32_0 : i32, i32, i32
  }
  func.func @transform_3(%arg0: i32, %arg1: i32, %arg2: i32) -> (i32, i32) {
    %c0_i32 = arith.constant 0 : i32
    %c0_i32_0 = arith.constant 0 : i32
    return %arg0, %c0_i32 : i32, i32
  }
  func.func @transform_4(%arg0: i32, %arg1: i32, %arg2: i32) -> (i32, i32) {
    %c0_i32 = arith.constant 0 : i32
    %c0_i32_0 = arith.constant 0 : i32
    return %arg0, %c0_i32 : i32, i32
  }
  func.func @transform_5(%arg0: i32, %arg1: i32, %arg2: i32) -> (i32, i32, i32) {
    %c0_i32 = arith.constant 0 : i32
    return %arg1, %arg0, %arg2 : i32, i32, i32
  }
}

</mosaic_0001>

<bundles_post_ra>
// kernel: downsample_forward.1
= control target key start
LH: loop header
LB: loop body
LE: loop exit
PB: predicated region body
PF: predicated region fallthrough
CT: control target
= control target key end

     0   :  { %10 = vsyncpa [#allocation3], 0  ;;  %s926_s0 = inlined_call_operand.vmem [shape: bf16[2,4,8], index: 0, kind: input, shape index: {}]   ;;  %s927_s1 = inlined_call_operand.vmem [shape: bf16[2,4,8], index: 1, kind: input, shape index: {}, may-alias: {1,2}]   ;;  %s928_s2 = inlined_call_operand.vmem [shape: bf16[2,4,8], index: 2, kind: input, shape index: {}, may-alias: {1,2}]   ;;  %s929_s3 = inlined_call_operand.vmem [shape: bf16[4,12], index: 3, kind: input, shape index: {}]   ;;  %s930_s4 = inlined_call_operand.vmem [shape: f32[4,1], index: 4, kind: input, shape index: {}]   ;;  %s931_s5 = inlined_call_operand.hbm [shape: f32[2,4,8], index: 5, kind: output, shape index: {}]  }
   0x1   :  { %12 = vsyncpa [#allocation3 + $0x1], 0  ;;  %s803_s18 = smov 0   ;;  %s805_s19 = smov 0  }
   0x2   :  { %s807_s20 = smov 0   ;;  %s809_s21 = smov 0  }
   0x3   :  { %s811_s22 = smov 0   ;;  %s813_s23 = smov 0  }
   0x4 LB: > { %s599_s24 = sadd.s32 4294967295, %s764_s23   ;;  %s600_s25 = sadd.s32 4294967294, %s764_s23   ;;  %s764_s23 = sphi %s813_s23, %s18_s23   ;;  %s760_s22 = sphi %s811_s22, %s938_s22   ;;  %s756_s21 = sphi %s809_s21, %s937_s21   ;;  %s752_s20 = sphi %s807_s20, %s936_s20   ;;  %s748_s19 = sphi %s805_s19, %s935_s19   ;;  %s744_s18 = sphi %s803_s18, %s934_s18  }
   0x5   : > { %s33_s26 = sadd.s32 1, %s760_s22  ;;  %s182_s27 = sadd.s32 1, %s752_s20 }
   0x6   : > { %p35_p0 = scmp.ge.s32.totalorder %s33_s26, 2  ;;  %p192_p1 = scmp.ne.s32.totalorder %s752_s20, %s748_s19 }
   0x7   : > { %p193_p2 = scmp.eq.s32.totalorder %s599_s24, 1  ;;  %p198_p3 = scmp.ne.s32.totalorder %s748_s19, %s744_s18 }
   0x8   : > { %s940_s26 = smov (%p35_p0, %s33_s26), 0  ;;  %p199_p5 = scmp.eq.s32.totalorder %s600_s25, 1 }
   0x9   : > { %p843_p4 = por %p193_p2, %p192_p1  ;;  %s175_s29 = ssub.s32 %s760_s22, %s940_s26 }
   0xa   : > { %p605_p6 = scmp.ge.s32.totalorder %s764_s23, 1  ;;  %p180_p7 = scmp.eq.s32.totalorder %s175_s29, 0 }
   0xb   : > { %p850_p8 = por %p199_p5, %p198_p3  ;;  %p258_p9 = scmp.lt.s32.totalorder %s764_s23, 3 }
   0xc   : > { %s856_s6 = scalar_select %p180_p7, %s752_s20, %s182_s27  }
   0xd   : > { %p259_p10 = pnand %p605_p6, %p258_p9 }
   0xe   : > { %p307_p11 = scmp.lt.s32.totalorder (!%p259_p10), %s756_s21, 1  ;;  %s770_s27 = smov (!%p259_p10), 121  }
   0xf   : > { %262 = sbr.rel (%p259_p10) target bundleno = 364 (0x16c), region = 40  ;;  %s771_s29 = smov (!%p259_p10), 1  }
  0x10   : > { %s304_s9 = sand.u32 (!%p259_p10), 1, %s748_s19   ;;  %s772_s24 = smov (!%p259_p10), [#allocation2]  }
  0x11   : > { %s606_s10 = sshll.u32 (!%p259_p10), %s304_s9, 2  ;;  %s692_s25 = sshll.u32 (!%p259_p10), %s772_s24, 4  ;;  %s693_s25 = int_to_ptr.vmem [resolvable:$false] %s692_s25 }
  0x12   : > { %s306_s12 = scalar_lea.vmem (!%p259_p10), [#allocation2], %s606_s10 }
  0x13   : > { %s467_s13 = sshll.u32 (!%p259_p10), %s306_s12, 4  ;;  %s882_s13 = int_to_ptr.vmem [resolvable:$true] %s467_s13 }
  0x14   : > { %v359_v0 = vlaneseq  ;;  %v766_v1 = vmov 1983009808   ;;  %s308_s7 = scalar_select %p307_p11, %s756_s21, 1  ;;  %v767_v5 = vmov 0.0   ;;  %vm768_vm0 = vmmov 0  }
  0x15   : > { %v357_v2 = vunpack.c.l.s4 %v766_v1  ;;  %618 = vmatprep.subr.bf16.mxu0 %v767_v5  ;;  %620 = vmatprep.mubr.msk.bf16.mxu0 %vm768_vm0, %v767_v5  ;;  %v396_v12 = vld [vmem:[%s930_s4] sm:$0xf]  ;;  %v769_v13 = vmov 0   ;;  %vm375_vm1 = vcmask 7168   ;;  %vm389_vm2 = vcmask 1041408   ;;  %p695_p1 = scmp.lt.s32.totalorder %s882_s13, %s693_s25 }
  0x16   : > { %v360_v3 = vshrl.u32 %v359_v0, 7  ;;  %s607_s8 = sshll.u32 %s308_s7, 1  ;;  %685 = vset.pattern.permute.xlu1 %v769_v13  ;;  %686 = vset.pattern.permute.xlu0 %v769_v13  ;;  %vm392_vm3 = vcmask 1043456   ;;  %vm406_vm4 = vcmask 1045504   ;;  %v395_v22 = vld [vmem:[%s929_s3] sm:$0x3] }
  0x17   : > { %v358_v4 = vunpack.c.0.s8 %v357_v2  ;;  %s324_s11 = scalar_lea.vmem %s928_s2, %s607_s8  ;;  %s313_s14 = scalar_lea.vmem %s926_s0, %s607_s8  ;;  %399 = vperm.xlu1 %685, %v396_v12   ;;  %vm402_vm5 = vcmask 97280   ;;  %vm449_vm6 = vcmask 60416  }
  0x18   : > { %v336_v7 = vld [vmem:[%s324_s11] sm:$0x3]  ;;  %s320_s17 = scalar_lea.vmem %s927_s1, %s607_s8  ;;  %s613_s11 = sshll.u32 %s756_s21, 6 }
  0x19   : > { %v361_v6 = vsub.s32 %v358_v4, %v360_v3  ;;  %v354_v8 = vmul.bf16 0.0, %v336_v7  ;;  %v687_v9 = vld [vmem:[%s313_s14] ss:$0 sps:$4 sm:$0x33]   ;;  %s880_s16 = scalar_lea.hbm %s931_s5, %s613_s11  ;;  %s688_s21 = scalar_lea.vmem %s882_s13, 64 }
  0x1a   : > { %v610_v14 = vld.sshfl [vmem:[%s320_s17] sm:$0x3 pattern:$0x76325410]  ;;  %s452_s17 = scalar_lea.sflag [#allocation3], %s304_s9  ;;  %p689_p12 = scmp.ne.s32.totalorder %s882_s13, %s688_s21 }
  0x1b   : > { %v362_v10 = vrot.slane %v354_v8, %v361_v6  ;;  %v387_v11 = vrot.slane %v687_v9, %v361_v6  ;;  %v388_v16 = vcombine.low %v610_v14, %v610_v14 }
  0x1c   : > { %p690_p13 = pnand %p689_p12, %p843_p4 }
  0x1d   : > { %363 = vrot.lane.b32.xlu0 %v362_v10, %s770_s27  ;;  %s694_s27 = scalar_lea.vmem %s693_s25, 128 }
  0x1e   : > { %p691_p0 = pneg %p690_p13  ;;  %p696_p2 = scmp.lt.s32.totalorder %s694_s27, %s688_s21 }
  0x20   : > { %p697_p3 = por %p696_p2, %p695_p1 }
  0x21   : > { %373 = vrot.lane.b32.xlu0 %v610_v14, %s771_s29 }
  0x22   : > { %p698_p5 = pnand %p697_p3, %p691_p0 }
  0x8f   : > { %v364_v15 = vpop.permute.xlu0 %363 }
  0x92   : > { %v400_v23 = vpop.permute.xlu1 %399 }
  0x93   : > { %v374_v17 = vpop.permute.xlu0 %373 }
  0x94   : > { %v378_v18 = vsel %vm375_vm1, %v364_v15, %v374_v17 }
  0x95   : > { %v391_v19 = vsel %vm389_vm2, %v378_v18, %v387_v11 }
  0x96   : > { %v394_v20 = vsel %vm392_vm3, %v391_v19, %v388_v16 }
  0x97   : > { %v407_v21 = vsel %vm406_vm4, %v394_v20, 0 }
  0x98   : > { %619 = vmatpush3.bf16.msra.mxu0 %v407_v21 }
  0x9b   : > { %621 = vmatmul.mubr.msk.bf16.vlgmr.msra.gmra.mxu0 %vm402_vm5, %v395_v22 }
 0x15b   : > { %v443_v24 = vpop.f32.mrf.mxu0 }
 0x15c   : > { %v444_v25 = vadd.f32 %v443_v24, %v400_v23 }
 0x15d   : > { %v622_v26 = vpop.f32.mrf.mxu0 }
 0x15e   : > { %450 = vst.msk [vmem:[%s306_s12] sm:$0xf] %vm449_vm6, %v444_v25 }
 0x15f   : > { %v446_v27 = vpop.f32.mrf.mxu0 }
 0x160   : > { %701 = shalt.err (!%p698_p5)
}
 0x161   : > { %s702_s29 = scalar_lea.hbm %s880_s16, 64  ;;  %s706_s9 = scalar_lea.hbm %s931_s5, 128 }
 0x162   : > { %p703_p6 = scmp.ne.s32.totalorder %s880_s16, %s702_s29  ;;  %p707_p10 = scmp.lt.s32.totalorder %s880_s16, %s931_s5 }
 0x163   : > { %p708_p11 = scmp.lt.s32.totalorder %s706_s9, %s702_s29 }
 0x164   : > { %p704_p7 = pnand %p703_p6, %p843_p4 }
 0x165   : > { %p709_p12 = por %p708_p11, %p707_p10 }
 0x166   : > { %p705_p9 = pneg %p704_p7 }
 0x168   : > { %p710_p13 = pnand %p709_p12, %p705_p9 }
 0x16a   : > { %713 = shalt.err (!%p710_p13)
}
 0x16b   : > { %624 = dma.vmem_to_hbm [thread:$0]  (%p843_p4), %s882_s13, 64, %s880_s16, %s452_s17   ;;  %v623_v28 = vpop.f32.mrf.mxu0 }
 0x16c PF: > { %p630_p0 = scmp.ge.s32.totalorder %s764_s23, 2  ;;  %s479_s12 = sand.u32 1, %s744_s18  }
 0x16d   : > { %s480_s14 = scalar_lea.sflag [#allocation3], %s479_s12 }
 0x16e   : > { %p627_p1 = pnand %p630_p0, %p850_p8 }
 0x170   : > { %p628_p2 = pneg %p627_p1 }
 0x172   : > { %739 = dma.done.wait (%p628_p2), %s480_s14, 64  }
 0x173   : > { %741 = vsyncadd (%p628_p2), %s480_s14, 4294967232  ;;  %s18_s23 = sadd.s32 1, %s764_s23   ;;  %s934_s18 = smov %s748_s19 }
 0x174   : > { %p15_p3 = scmp.ge.s32.totalorder %s18_s23, 4   ;;  %s935_s19 = smov %s752_s20 }
 0x175   : > { %s936_s20 = smov %s856_s6  ;;  %s937_s21 = smov %s760_s22 }
 0x176   : > { %s938_s22 = smov %s940_s26  ;;  %17 = sbr.rel (!%p15_p3) target bundleno = 4 (0x4), region = 87 }
 0x17b   :  { %485 = vsyncpa [#allocation3], 1 }
 0x17c   :  { %487 = vsyncpa [#allocation3 + $0x1], 1 }

</bundles_post_ra>
